<compile_context>
chip_gen: v5e
topology: v5e:2x2
jax: 0.10.0
libtpu: 0.0.40
codegen_flags: <defaults>
</compile_context>

<pallas_src>
import functools

import jax
import jax.numpy as jnp
from jax.experimental import pallas as pl
from jax.experimental.pallas import tpu as pltpu


def _round_up(x, m):
    return (x + m - 1) // m * m


# ---------------------------------------------------------------------------
# Kernel: fused 3-layer MLP (two ReLUs), one batch tile per grid step.
#   x: (TB, Dp) bf16; w*: bf16 (padded); b*: (1, Hp/Cp) f32.
#   hidden/out: f32, lane-dense padded widths.
# ---------------------------------------------------------------------------
def _mlp_kernel(x_ref, w1_ref, b1_ref, w2_ref, b2_ref, w3_ref, b3_ref,
                hidden_ref, out_ref):
    x = x_ref[...]                                                     # (TB, Dp) bf16
    h1 = jnp.dot(x, w1_ref[...], preferred_element_type=jnp.float32) + b1_ref[...]
    h1 = jnp.maximum(h1, 0.0)                                          # ReLU (f32)
    h2 = jnp.dot(h1.astype(w2_ref.dtype), w2_ref[...],
                 preferred_element_type=jnp.float32) + b2_ref[...]
    h2 = jnp.maximum(h2, 0.0)                                          # ReLU (f32)
    out = jnp.dot(h2.astype(w3_ref.dtype), w3_ref[...],
                  preferred_element_type=jnp.float32) + b3_ref[...]
    hidden_ref[...] = h2.astype(hidden_ref.dtype)
    out_ref[...] = out.astype(out_ref.dtype)


# ---------------------------------------------------------------------------
# Wrapper: reshape/pad/cast glue + pallas_call plumbing.
# ---------------------------------------------------------------------------
@functools.partial(jax.jit, static_argnames=("grayscale_model", "n_colors"))
def mlp_forward(x, params, *, grayscale_model=False, n_colors=3):
    """x: (B, n_colors, 14, 14) float32. Returns (hidden, out) as in the module."""
    w1, b1, w2, b2, w3, b3 = params          # weights already (in, out), f32
    B = x.shape[0]
    H = w1.shape[1]
    C = w3.shape[1]

    # Flatten NCHW -> (B, n_colors*196).  For grayscale, fold the color sum
    # into lin1's weights instead of reducing the input (saves a pass over x).
    X = x.reshape(B, n_colors * 14 * 14)
    if grayscale_model:
        w1_eff = jnp.tile(w1, (n_colors, 1))          # (n_colors*196, H)
    else:
        w1_eff = w1                                   # (n_colors*196, H)
    D = w1_eff.shape[0]

    # Lane/MXU-friendly padded dims.
    Dp = _round_up(D, 128)          # 588 -> 640
    Hp = _round_up(H, 128)          # 32  -> 128
    Cp = _round_up(C, 128)          # 2   -> 128

    # Batch tile: multiple of 8 (f32 sublane); 512 once the batch is large.
    TB = 512 if B >= 512 else _round_up(B, 8)
    Bp = _round_up(B, TB)

    f32, bf16 = jnp.float32, jnp.bfloat16

    # Zero-padded, bf16 MXU operands; biases stay f32 (added in the accumulator).
    Xp = jnp.zeros((Bp, Dp), bf16).at[:B, :D].set(X.astype(bf16))
    w1p = jnp.zeros((Dp, Hp), bf16).at[:D, :H].set(w1_eff.astype(bf16))
    b1p = jnp.zeros((1, Hp), f32).at[:, :H].set(b1.reshape(1, H))
    w2p = jnp.zeros((Hp, Hp), bf16).at[:H, :H].set(w2.astype(bf16))
    b2p = jnp.zeros((1, Hp), f32).at[:, :H].set(b2.reshape(1, H))
    w3p = jnp.zeros((Hp, Cp), bf16).at[:H, :C].set(w3.astype(bf16))
    b3p = jnp.zeros((1, Cp), f32).at[:, :C].set(b3.reshape(1, C))

    grid = (Bp // TB,)

    # VMEM budget (double-buffered X & outputs + weights), with headroom.
    tile_bytes = (
        2 * TB * Dp * 2                                   # X double buffer (bf16)
        + 2 * (Dp * Hp + Hp * Hp + Hp * Cp) * 2           # weights (bf16), counted x2
        + 2 * 3 * Hp * 4                                  # biases (f32)
        + 2 * TB * Hp * 4 + 2 * TB * Cp * 4               # output double buffers (f32)
    )
    vmem_limit = int(min(max(2 * tile_bytes, 8 * 1024 * 1024), 32 * 1024 * 1024))

    flops = 2 * Bp * (Dp * Hp + Hp * Hp + Hp * Cp)
    bytes_accessed = (
        Bp * Dp * 2
        + (Dp * Hp + Hp * Hp + Hp * Cp) * 2
        + (2 * Hp + Cp) * 4
        + Bp * Hp * 4 + Bp * Cp * 4
    )

    hidden_p, out_p = pl.pallas_call(
        _mlp_kernel,
        out_shape=(
            jax.ShapeDtypeStruct((Bp, Hp), f32),
            jax.ShapeDtypeStruct((Bp, Cp), f32),
        ),
        grid=grid,
        in_specs=[
            pl.BlockSpec((TB, Dp), lambda i: (i, 0)),     # X: batch-tiled
            pl.BlockSpec((Dp, Hp), lambda i: (0, 0)),     # w1: resident
            pl.BlockSpec((1, Hp), lambda i: (0, 0)),      # b1
            pl.BlockSpec((Hp, Hp), lambda i: (0, 0)),     # w2
            pl.BlockSpec((1, Hp), lambda i: (0, 0)),      # b2
            pl.BlockSpec((Hp, Cp), lambda i: (0, 0)),     # w3
            pl.BlockSpec((1, Cp), lambda i: (0, 0)),      # b3
        ],
        out_specs=(
            pl.BlockSpec((TB, Hp), lambda i: (i, 0)),
            pl.BlockSpec((TB, Cp), lambda i: (i, 0)),
        ),
        compiler_params=pltpu.CompilerParams(
            dimension_semantics=("parallel",),
            vmem_limit_bytes=vmem_limit,
        ),
        cost_estimate=pl.CostEstimate(
            flops=flops, transcendentals=0, bytes_accessed=bytes_accessed),
    )(Xp, w1p, b1p, w2p, b2p, w3p, b3p)

    # Slice back to the module's true output shapes.
    return hidden_p[:B, :H], out_p[:B, :C]


# ---------------------------------------------------------------------------
# Deterministic parameters (xavier_uniform_ weights / zero biases), stored
# transposed to (in, out) so the kernel computes x @ W.
# ---------------------------------------------------------------------------
def init_params(key, in_dim, hidden_dim, n_classes):
    def xavier(k, fan_in, fan_out):
        bound = (6.0 / (fan_in + fan_out)) ** 0.5
        w = jax.random.uniform(k, (fan_out, fan_in), jnp.float32, -bound, bound)
        return w.T                                       # (in, out)

    k1, k2, k3 = jax.random.split(key, 3)
    w1 = xavier(k1, in_dim, hidden_dim)
    b1 = jnp.zeros((1, hidden_dim), jnp.float32)
    w2 = xavier(k2, hidden_dim, hidden_dim)
    b2 = jnp.zeros((1, hidden_dim), jnp.float32)
    w3 = xavier(k3, hidden_dim, n_classes)
    b3 = jnp.zeros((1, n_classes), jnp.float32)
    return (w1, b1, w2, b2, w3, b3)


# Reference matching the kernel's arithmetic (bf16 MXU operands, f32 accumulate,
# grayscale color-sum folded into lin1's weights).
def _reference(x, params, grayscale_model=False, n_colors=3):
    w1, b1, w2, b2, w3, b3 = params
    B = x.shape[0]
    X = x.reshape(B, n_colors * 14 * 14)
    w1_eff = jnp.tile(w1, (n_colors, 1)) if grayscale_model else w1
    bf16, f32 = jnp.bfloat16, jnp.float32
    h = jnp.maximum(jnp.dot(X.astype(bf16), w1_eff.astype(bf16),
                            preferred_element_type=f32) + b1, 0.0)
    h = jnp.maximum(jnp.dot(h.astype(bf16), w2.astype(bf16),
                            preferred_element_type=f32) + b2, 0.0)
    out = jnp.dot(h.astype(bf16), w3.astype(bf16), preferred_element_type=f32) + b3
    return h, out


if __name__ == "__main__":
    key = jax.random.PRNGKey(0)
    k_x, k_p1, k_p2 = jax.random.split(key, 3)

    batch, n_colors, hidden_dim, n_classes = 2, 3, 32, 2
    x = jax.random.normal(k_x, (batch, n_colors, 14, 14), jnp.float32)

    # --- default color model (grayscale_model=False) ---
    params = init_params(k_p1, n_colors * 14 * 14, hidden_dim, n_classes)
    hidden, out = mlp_forward(x, params, grayscale_model=False, n_colors=n_colors)
    jax.block_until_ready((hidden, out))
    h_ref, o_ref = _reference(x, params, grayscale_model=False, n_colors=n_colors)
    assert hidden.shape == (batch, hidden_dim) and out.shape == (batch, n_classes)
    assert jnp.allclose(hidden, h_ref, atol=2e-3, rtol=2e-3)
    assert jnp.allclose(out, o_ref, atol=2e-3, rtol=2e-3)

    # --- grayscale model (color sum folded into lin1 weights) ---
    params_g = init_params(k_p2, 14 * 14, hidden_dim, n_classes)
    hidden_g, out_g = mlp_forward(x, params_g, grayscale_model=True, n_colors=n_colors)
    jax.block_until_ready((hidden_g, out_g))
    h_ref_g, o_ref_g = _reference(x, params_g, grayscale_model=True, n_colors=n_colors)
    assert hidden_g.shape == (batch, hidden_dim) and out_g.shape == (batch, n_classes)
    assert jnp.allclose(hidden_g, h_ref_g, atol=2e-3, rtol=2e-3)
    assert jnp.allclose(out_g, o_ref_g, atol=2e-3, rtol=2e-3)

    print("KERNEL_OK")
</pallas_src>

<mosaic_0001>
module attributes {stable_mosaic.version = 11 : i64} {
  func.func @_mlp_kernel(%arg0: i32, %arg1: memref<8x640xbf16, #tpu.memory_space<vmem>>, %arg2: memref<640x128xbf16, #tpu.memory_space<vmem>>, %arg3: memref<1x128xf32, #tpu.memory_space<vmem>>, %arg4: memref<128x128xbf16, #tpu.memory_space<vmem>>, %arg5: memref<1x128xf32, #tpu.memory_space<vmem>>, %arg6: memref<128x128xbf16, #tpu.memory_space<vmem>>, %arg7: memref<1x128xf32, #tpu.memory_space<vmem>>, %arg8: memref<8x128xf32, #tpu.memory_space<vmem>>, %arg9: memref<8x128xf32, #tpu.memory_space<vmem>>) attributes {dimension_semantics = [#tpu.dimension_semantics<parallel>], iteration_bounds = array<i64: 1>, scalar_prefetch = 0 : i64, scratch_operands = 0 : i64, tpu.core_type = #tpu.core_type<tc>, window_params = [{transform_indices = @transform_0, window_bounds = array<i64: 8, 640>}, {pipeline_mode = #tpu.pipeline_mode<synchronous>, transform_indices = @transform_1, window_bounds = array<i64: 640, 128>}, {pipeline_mode = #tpu.pipeline_mode<synchronous>, transform_indices = @transform_2, window_bounds = array<i64: 1, 128>}, {pipeline_mode = #tpu.pipeline_mode<synchronous>, transform_indices = @transform_3, window_bounds = array<i64: 128, 128>}, {pipeline_mode = #tpu.pipeline_mode<synchronous>, transform_indices = @transform_4, window_bounds = array<i64: 1, 128>}, {pipeline_mode = #tpu.pipeline_mode<synchronous>, transform_indices = @transform_5, window_bounds = array<i64: 128, 128>}, {pipeline_mode = #tpu.pipeline_mode<synchronous>, transform_indices = @transform_6, window_bounds = array<i64: 1, 128>}, {transform_indices = @transform_7, window_bounds = array<i64: 8, 128>}, {transform_indices = @transform_8, window_bounds = array<i64: 8, 128>}]} {
    %c0 = arith.constant 0 : index
    %c0_0 = arith.constant 0 : index
    %0 = vector.load %arg1[%c0, %c0_0] : memref<8x640xbf16, #tpu.memory_space<vmem>>, vector<8x640xbf16>
    %c0_1 = arith.constant 0 : index
    %c0_2 = arith.constant 0 : index
    %1 = vector.load %arg2[%c0_1, %c0_2] : memref<640x128xbf16, #tpu.memory_space<vmem>>, vector<640x128xbf16>
    %cst = arith.constant dense<0.000000e+00> : vector<8x128xf32>
    %2 = tpu.matmul %0, %1, %cst {dimension_numbers = #tpu.dot_dimension_numbers<[1], [0], [0], [1], [0, 0, 1, 1], [], []>} : vector<8x640xbf16>, vector<640x128xbf16>, vector<8x128xf32> -> vector<8x128xf32>
    %c0_3 = arith.constant 0 : index
    %c0_4 = arith.constant 0 : index
    %3 = vector.load %arg3[%c0_3, %c0_4] : memref<1x128xf32, #tpu.memory_space<vmem>>, vector<1x128xf32>
    %4 = vector.broadcast %3 : vector<1x128xf32> to vector<8x128xf32>
    %5 = arith.addf %2, %4 : vector<8x128xf32>
    %cst_5 = arith.constant 0.000000e+00 : f32
    %6 = vector.broadcast %cst_5 : f32 to vector<8x128xf32>
    %7 = arith.maximumf %5, %6 : vector<8x128xf32>
    %8 = arith.truncf %7 : vector<8x128xf32> to vector<8x128xbf16>
    %c0_6 = arith.constant 0 : index
    %c0_7 = arith.constant 0 : index
    %9 = vector.load %arg4[%c0_6, %c0_7] : memref<128x128xbf16, #tpu.memory_space<vmem>>, vector<128x128xbf16>
    %cst_8 = arith.constant dense<0.000000e+00> : vector<8x128xf32>
    %10 = tpu.matmul %8, %9, %cst_8 {dimension_numbers = #tpu.dot_dimension_numbers<[1], [0], [0], [1], [0, 0, 1, 1], [], []>} : vector<8x128xbf16>, vector<128x128xbf16>, vector<8x128xf32> -> vector<8x128xf32>
    %c0_9 = arith.constant 0 : index
    %c0_10 = arith.constant 0 : index
    %11 = vector.load %arg5[%c0_9, %c0_10] : memref<1x128xf32, #tpu.memory_space<vmem>>, vector<1x128xf32>
    %12 = vector.broadcast %11 : vector<1x128xf32> to vector<8x128xf32>
    %13 = arith.addf %10, %12 : vector<8x128xf32>
    %cst_11 = arith.constant 0.000000e+00 : f32
    %14 = vector.broadcast %cst_11 : f32 to vector<8x128xf32>
    %15 = arith.maximumf %13, %14 : vector<8x128xf32>
    %16 = arith.truncf %15 : vector<8x128xf32> to vector<8x128xbf16>
    %c0_12 = arith.constant 0 : index
    %c0_13 = arith.constant 0 : index
    %17 = vector.load %arg6[%c0_12, %c0_13] : memref<128x128xbf16, #tpu.memory_space<vmem>>, vector<128x128xbf16>
    %cst_14 = arith.constant dense<0.000000e+00> : vector<8x128xf32>
    %18 = tpu.matmul %16, %17, %cst_14 {dimension_numbers = #tpu.dot_dimension_numbers<[1], [0], [0], [1], [0, 0, 1, 1], [], []>} : vector<8x128xbf16>, vector<128x128xbf16>, vector<8x128xf32> -> vector<8x128xf32>
    %c0_15 = arith.constant 0 : index
    %c0_16 = arith.constant 0 : index
    %19 = vector.load %arg7[%c0_15, %c0_16] : memref<1x128xf32, #tpu.memory_space<vmem>>, vector<1x128xf32>
    %20 = vector.broadcast %19 : vector<1x128xf32> to vector<8x128xf32>
    %21 = arith.addf %18, %20 : vector<8x128xf32>
    %c0_17 = arith.constant 0 : index
    %c0_18 = arith.constant 0 : index
    %22 = vector.load %arg8[%c0_17, %c0_18] : memref<8x128xf32, #tpu.memory_space<vmem>>, vector<8x128xf32>
    tpu.vector_store %arg8[%c0_17, %c0_18], %15 {strides = array<i32>} : memref<8x128xf32, #tpu.memory_space<vmem>>, vector<8x128xf32>,
    %c0_19 = arith.constant 0 : index
    %c0_20 = arith.constant 0 : index
    %23 = vector.load %arg9[%c0_19, %c0_20] : memref<8x128xf32, #tpu.memory_space<vmem>>, vector<8x128xf32>
    tpu.vector_store %arg9[%c0_19, %c0_20], %21 {strides = array<i32>} : memref<8x128xf32, #tpu.memory_space<vmem>>, vector<8x128xf32>,
    return
  }
  func.func @transform_0(%arg0: i32) -> (i32, i32) {
    %c0_i32 = arith.constant 0 : i32
    %c0_i32_0 = arith.constant 0 : i32
    return %arg0, %c0_i32 : i32, i32
  }
  func.func @transform_1(%arg0: i32) -> (i32, i32) {
    %c0_i32 = arith.constant 0 : i32
    %c0_i32_0 = arith.constant 0 : i32
    %c0_i32_1 = arith.constant 0 : i32
    return %c0_i32, %c0_i32_0 : i32, i32
  }
  func.func @transform_2(%arg0: i32) -> (i32, i32) {
    %c0_i32 = arith.constant 0 : i32
    %c0_i32_0 = arith.constant 0 : i32
    %c0_i32_1 = arith.constant 0 : i32
    return %c0_i32, %c0_i32_0 : i32, i32
  }
  func.func @transform_3(%arg0: i32) -> (i32, i32) {
    %c0_i32 = arith.constant 0 : i32
    %c0_i32_0 = arith.constant 0 : i32
    %c0_i32_1 = arith.constant 0 : i32
    return %c0_i32, %c0_i32_0 : i32, i32
  }
  func.func @transform_4(%arg0: i32) -> (i32, i32) {
    %c0_i32 = arith.constant 0 : i32
    %c0_i32_0 = arith.constant 0 : i32
    %c0_i32_1 = arith.constant 0 : i32
    return %c0_i32, %c0_i32_0 : i32, i32
  }
  func.func @transform_5(%arg0: i32) -> (i32, i32) {
    %c0_i32 = arith.constant 0 : i32
    %c0_i32_0 = arith.constant 0 : i32
    %c0_i32_1 = arith.constant 0 : i32
    return %c0_i32, %c0_i32_0 : i32, i32
  }
  func.func @transform_6(%arg0: i32) -> (i32, i32) {
    %c0_i32 = arith.constant 0 : i32
    %c0_i32_0 = arith.constant 0 : i32
    %c0_i32_1 = arith.constant 0 : i32
    return %c0_i32, %c0_i32_0 : i32, i32
  }
  func.func @transform_7(%arg0: i32) -> (i32, i32) {
    %c0_i32 = arith.constant 0 : i32
    %c0_i32_0 = arith.constant 0 : i32
    return %arg0, %c0_i32 : i32, i32
  }
  func.func @transform_8(%arg0: i32) -> (i32, i32) {
    %c0_i32 = arith.constant 0 : i32
    %c0_i32_0 = arith.constant 0 : i32
    return %arg0, %c0_i32 : i32, i32
  }
}

</mosaic_0001>

<bundles_post_ra>
// kernel: mlp_forward.1
= control target key start
LH: loop header
LB: loop body
LE: loop exit
PB: predicated region body
PF: predicated region fallthrough
CT: control target
= control target key end

     0   :  { %s1134_s1 = inlined_call_operand.vmem [shape: bf16[640,128], index: 1, kind: input, shape index: {}]   ;;  %s1135_s2 = inlined_call_operand.vmem [shape: f32[1,128], index: 2, kind: input, shape index: {}]   ;;  %s1136_s0 = inlined_call_operand.vmem [shape: bf16[8,640], index: 0, kind: input, shape index: {}]   ;;  %s1137_s4 = inlined_call_operand.vmem [shape: f32[1,128], index: 4, kind: input, shape index: {}]   ;;  %s1138_s3 = inlined_call_operand.vmem [shape: bf16[128,128], index: 3, kind: input, shape index: {}]   ;;  %s1139_s5 = inlined_call_operand.vmem [shape: bf16[128,128], index: 5, kind: input, shape index: {}]   ;;  %s1140_s6 = inlined_call_operand.vmem [shape: f32[1,128], index: 6, kind: input, shape index: {}]   ;;  %s1141_s7 = inlined_call_operand.vmem [shape: f32[8,128], index: 7, kind: output, shape index: {0}]   ;;  %s1142_s8 = inlined_call_operand.vmem [shape: f32[8,128], index: 8, kind: output, shape index: {1}]  }
   0x1   :  { %v845_v0 = vld [vmem:[%s1134_s1 + $0x38] sm:$0xff]  ;;  %v844_v3 = vld [vmem:[%s1134_s1 + $0x30] sm:$0xff]  ;;  %v843_v8 = vld [vmem:[%s1134_s1 + $0x28] sm:$0xff] }
   0x2   :  { %v861_v1 = vld [vmem:[%s1134_s1 + $0xb8] sm:$0xff]  ;;  %373 = vmatpush.bf16.msra.mxu0 %v845_v0  ;;  %v860_v5 = vld [vmem:[%s1134_s1 + $0xb0] sm:$0xff]  ;;  %v859_v9 = vld [vmem:[%s1134_s1 + $0xa8] sm:$0xff] }
   0x3   :  { %v869_v2 = vld [vmem:[%s1134_s1 + $0xf8] sm:$0xff]  ;;  %399 = vmatpush.bf16.msra.mxu2 %v861_v1  ;;  %v868_v6 = vld [vmem:[%s1134_s1 + $0xf0] sm:$0xff]  ;;  %v867_v10 = vld [vmem:[%s1134_s1 + $0xe8] sm:$0xff] }
   0x4   :  { %v853_v4 = vld [vmem:[%s1134_s1 + $0x78] sm:$0xff]  ;;  %412 = vmatpush.bf16.msra.mxu3 %v869_v2  ;;  %v852_v7 = vld [vmem:[%s1134_s1 + $0x70] sm:$0xff]  ;;  %v851_v11 = vld [vmem:[%s1134_s1 + $0x68] sm:$0xff] }
   0x5   :  { %386 = vmatpush.bf16.msra.mxu1 %v853_v4  ;;  %v842_v12 = vld [vmem:[%s1134_s1 + $0x20] sm:$0xff]  ;;  %v841_v16 = vld [vmem:[%s1134_s1 + $0x18] sm:$0xff]  ;;  %v840_v20 = vld [vmem:[%s1134_s1 + $0x10] sm:$0xff] }
   0x6   :  { %374 = vmatpush.bf16.msra.mxu0 %v844_v3  ;;  %v858_v13 = vld [vmem:[%s1134_s1 + $0xa0] sm:$0xff]  ;;  %v857_v17 = vld [vmem:[%s1134_s1 + $0x98] sm:$0xff]  ;;  %v856_v21 = vld [vmem:[%s1134_s1 + $0x90] sm:$0xff] }
   0x7   :  { %400 = vmatpush.bf16.msra.mxu2 %v860_v5  ;;  %v866_v14 = vld [vmem:[%s1134_s1 + $0xe0] sm:$0xff]  ;;  %v865_v18 = vld [vmem:[%s1134_s1 + $0xd8] sm:$0xff]  ;;  %v864_v22 = vld [vmem:[%s1134_s1 + $0xd0] sm:$0xff] }
   0x8   :  { %413 = vmatpush.bf16.msra.mxu3 %v868_v6  ;;  %v850_v15 = vld [vmem:[%s1134_s1 + $0x60] sm:$0xff]  ;;  %v849_v19 = vld [vmem:[%s1134_s1 + $0x58] sm:$0xff]  ;;  %v848_v23 = vld [vmem:[%s1134_s1 + $0x50] sm:$0xff] }
   0x9   :  { %387 = vmatpush.bf16.msra.mxu1 %v852_v7  ;;  %v839_v24 = vld [vmem:[%s1134_s1 + $0x8] sm:$0xff]  ;;  %v28_v25 = vld [vmem:[%s1136_s0] sm:$0xff]  ;;  %v877_v33 = vld [vmem:[%s1134_s1 + $0x138] sm:$0xff] }
   0xa   :  { %375 = vmatpush.bf16.msra.mxu0 %v843_v8  ;;  %v855_v26 = vld [vmem:[%s1134_s1 + $0x88] sm:$0xff]  ;;  %v118_v30 = vunpack.c.l.b16 %v28_v25  ;;  %v838_v31 = vld [vmem:[%s1134_s1] sm:$0xff]  ;;  %v119_v38 = vunpack.c.h.b16 %v28_v25  ;;  %v876_v41 = vld [vmem:[%s1134_s1 + $0x130] sm:$0xff] }
   0xb   :  { %401 = vmatpush.bf16.msra.mxu2 %v859_v9  ;;  %v863_v27 = vld [vmem:[%s1134_s1 + $0xc8] sm:$0xff]  ;;  %v854_v34 = vld [vmem:[%s1134_s1 + $0x80] sm:$0xff]  ;;  %v873_v46 = vld [vmem:[%s1134_s1 + $0x118] sm:$0xff] }
   0xc   :  { %414 = vmatpush.bf16.msra.mxu3 %v867_v10  ;;  %v29_v28 = vld [vmem:[%s1136_s0 + $0x8] sm:$0xff]  ;;  %v862_v36 = vld [vmem:[%s1134_s1 + $0xc0] sm:$0xff]  ;;  %v123_v39 = vpack.c.b16 %v118_v30, %v118_v30  ;;  %v124_v43 = vpack.c.b16 %v119_v38, %v119_v38  ;;  %v872_v47 = vld [vmem:[%s1134_s1 + $0x110] sm:$0xff] }
   0xd   :  { %388 = vmatpush.bf16.msra.mxu1 %v851_v11  ;;  %v847_v29 = vld [vmem:[%s1134_s1 + $0x48] sm:$0xff]  ;;  %v120_v32 = vunpack.c.l.b16 %v29_v28  ;;  %v121_v35 = vunpack.c.h.b16 %v29_v28  ;;  %v846_v37 = vld [vmem:[%s1134_s1 + $0x40] sm:$0xff]  ;;  %v30_v49 = vld [vmem:[%s1136_s0 + $0x10] sm:$0xf] }
   0xe   :  { %376 = vmatpush.bf16.msra.mxu0 %v842_v12  ;;  %v875_v44 = vld [vmem:[%s1134_s1 + $0x128] sm:$0xff]  ;;  %v874_v45 = vld [vmem:[%s1134_s1 + $0x120] sm:$0xff]  ;;  %v122_v50 = vunpack.c.l.b16 %v30_v49  ;;  %v885_v53 = vld [vmem:[%s1138_s3 + $0x38] sm:$0xff] }
   0xf   :  { %402 = vmatpush.bf16.msra.mxu2 %v858_v13  ;;  %v125_v40 = vpack.c.b16 %v120_v32, %v120_v32  ;;  %v126_v42 = vpack.c.b16 %v121_v35, %v121_v35  ;;  %v871_v48 = vld [vmem:[%s1134_s1 + $0x108] sm:$0xff]  ;;  %v870_v51 = vld [vmem:[%s1134_s1 + $0x100] sm:$0xff]  ;;  %v884_v54 = vld [vmem:[%s1138_s3 + $0x30] sm:$0xff] }
  0x10   :  { %415 = vmatpush.bf16.msra.mxu3 %v866_v14  ;;  %v127_v52 = vpack.c.b16 %v122_v50, %v122_v50  ;;  %v883_v55 = vld [vmem:[%s1138_s3 + $0x28] sm:$0xff]  ;;  %v882_v56 = vld [vmem:[%s1138_s3 + $0x20] sm:$0xff]  ;;  %v881_v57 = vld [vmem:[%s1138_s3 + $0x18] sm:$0xff] }
  0x11   :  { %389 = vmatpush.bf16.msra.mxu1 %v850_v15  ;;  %v880_v58 = vld [vmem:[%s1138_s3 + $0x10] sm:$0xff]  ;;  %v879_v59 = vld [vmem:[%s1138_s3 + $0x8] sm:$0xff]  ;;  %v878_v60 = vld [vmem:[%s1138_s3] sm:$0xff] }
  0x12   :  { %377 = vmatpush.bf16.msra.mxu0 %v841_v16  ;;  %v893_v63 = vld [vmem:[%s1139_s5 + $0x38] sm:$0xff]  ;;  %v892_v1 = vld [vmem:[%s1139_s5 + $0x30] sm:$0xff]  ;;  %v891_v5 = vld [vmem:[%s1139_s5 + $0x28] sm:$0xff] }
  0x13   :  { %403 = vmatpush.bf16.msra.mxu2 %v857_v17  ;;  %v894_v6 = vld [vmem:[%s1135_s2] ss:$0 sm:$0xff]  ;;  %v889_v11 = vld [vmem:[%s1139_s5 + $0x18] sm:$0xff]  ;;  %v888_v13 = vld [vmem:[%s1139_s5 + $0x10] sm:$0xff] }
  0x14   :  { %416 = vmatpush.bf16.msra.mxu3 %v865_v18  ;;  %v890_v8 = vld [vmem:[%s1139_s5 + $0x20] sm:$0xff] }
  0x15   :  { %390 = vmatpush.bf16.msra.mxu1 %v849_v19 }
  0x16   :  { %378 = vmatpush.bf16.msra.mxu0 %v840_v20 }
  0x17   :  { %404 = vmatpush.bf16.msra.mxu2 %v856_v21  ;;  %v887_v21 = vld [vmem:[%s1139_s5 + $0x8] sm:$0xff] }
  0x18   :  { %417 = vmatpush.bf16.msra.mxu3 %v864_v22  ;;  %v886_v22 = vld [vmem:[%s1139_s5] sm:$0xff] }
  0x19   :  { %391 = vmatpush.bf16.msra.mxu1 %v848_v23  ;;  %v895_v23 = vld [vmem:[%s1137_s4] ss:$0 sm:$0xff] }
  0x1a   :  { %379 = vmatpush.bf16.msra.mxu0 %v839_v24 }
  0x1b   :  { %405 = vmatpush.bf16.msra.mxu2 %v855_v26 }
  0x1c   :  { %418 = vmatpush.bf16.msra.mxu3 %v863_v27 }
  0x1d   :  { %392 = vmatpush.bf16.msra.mxu1 %v847_v29  ;;  %v896_v29 = vld [vmem:[%s1140_s6] ss:$0 sm:$0xff] }
  0x1e   :  { %380 = vmatpush.bf16.msra.mxu0 %v838_v31 }
  0x1f   :  { %406 = vmatpush.bf16.msra.mxu2 %v854_v34 }
  0x20   :  { %419 = vmatpush.bf16.msra.mxu3 %v862_v36 }
  0x21   :  { %393 = vmatpush.bf16.msra.mxu1 %v846_v37  ;;  %381 = vmatmul.bf16.vlgmr.msra.gmra.mxu0 %v123_v39 }
  0x22   :  { %425 = vmatpush.bf16.msrb.mxu0 %v877_v33  ;;  %407 = vmatmul.bf16.vlgmr.msra.gmra.mxu2 %v125_v40 }
  0x23   :  { %420 = vmatmul.bf16.vlgmr.msra.gmra.mxu3 %v126_v42  ;;  %591 = vmatpush.bf16.msrb.mxu2 %v893_v63 }
  0x24   :  { %394 = vmatmul.bf16.vlgmr.msra.gmra.mxu1 %v124_v43 }
  0x25   :  { %508 = vmatpush.bf16.msrb.mxu1 %v885_v53 }
  0x26   :  { %426 = vmatpush.bf16.msrb.mxu0 %v876_v41 }
  0x27   :  { %592 = vmatpush.bf16.msrb.mxu2 %v892_v1 }
  0x29   :  { %509 = vmatpush.bf16.msrb.mxu1 %v884_v54 }
  0x2a   :  { %427 = vmatpush.bf16.msrb.mxu0 %v875_v44 }
  0x2b   :  { %593 = vmatpush.bf16.msrb.mxu2 %v891_v5 }
  0x2d   :  { %510 = vmatpush.bf16.msrb.mxu1 %v883_v55 }
  0x2e   :  { %428 = vmatpush.bf16.msrb.mxu0 %v874_v45 }
  0x2f   :  { %594 = vmatpush.bf16.msrb.mxu2 %v890_v8 }
  0x31   :  { %511 = vmatpush.bf16.msrb.mxu1 %v882_v56 }
  0x32   :  { %429 = vmatpush.bf16.msrb.mxu0 %v873_v46 }
  0x33   :  { %595 = vmatpush.bf16.msrb.mxu2 %v889_v11 }
  0x35   :  { %512 = vmatpush.bf16.msrb.mxu1 %v881_v57 }
  0x36   :  { %430 = vmatpush.bf16.msrb.mxu0 %v872_v47 }
  0x37   :  { %596 = vmatpush.bf16.msrb.mxu2 %v888_v13 }
  0x39   :  { %513 = vmatpush.bf16.msrb.mxu1 %v880_v58 }
  0x3a   :  { %431 = vmatpush.bf16.msrb.mxu0 %v871_v48 }
  0x3b   :  { %597 = vmatpush.bf16.msrb.mxu2 %v887_v21 }
  0x3d   :  { %514 = vmatpush.bf16.msrb.mxu1 %v879_v59 }
  0x3e   :  { %432 = vmatpush.bf16.msrb.mxu0 %v870_v51 }
  0x3f   :  { %598 = vmatpush.bf16.msrb.mxu2 %v886_v22 }
  0x41   :  { %433 = vmatmul.bf16.vlgmr.msrb.gmra.mxu0 %v127_v52  ;;  %515 = vmatpush.bf16.msrb.mxu1 %v878_v60 }
  0x9e   :  { %v382_v61 = vpop.f32.mrf.mxu0 }
  0x9f   :  { %v383_v9 = vadd.f32 %v894_v6, %v382_v61 }
  0xa1   :  { %v395_v62 = vpop.f32.mrf.mxu1 }
  0xa2   :  { %v396_v12 = vadd.f32 %v395_v62, %v383_v9 }
  0xa5   :  { %v408_v0 = vpop.f32.mrf.mxu2 }
  0xa6   :  { %v384_v2 = vpop.f32.mrf.mxu0  ;;  %v421_v3 = vpop.f32.mrf.mxu3  ;;  %v409_v14 = vadd.f32 %v408_v0, %v396_v12 }
  0xa8   :  { %v422_v15 = vadd.f32 %v421_v3, %v409_v14 }
  0xa9   :  { %v397_v4 = vpop.f32.mrf.mxu1 }
  0xad   :  { %v410_v7 = vpop.f32.mrf.mxu2 }
  0xae   :  { %v423_v10 = vpop.f32.mrf.mxu3 }
  0xbe   :  { %v434_v16 = vpop.f32.mrf.mxu0 }
  0xbf   :  { %v435_v17 = vadd.f32 %v434_v16, %v422_v15 }
  0xc1   :  { %v438_v18 = vmax.f32 %v435_v17, 0.0 }
  0xc3   :  { %v439_v19 = vpack.c.bf16 %v438_v18, %v438_v18 }
  0xc5   :  { %516 = vmatmul.bf16.vlgmr.msrb.gmra.mxu1 %v439_v19 }
  0xc6   :  { %v436_v20 = vpop.f32.mrf.mxu0 }
 0x142   :  { %v517_v24 = vpop.f32.mrf.mxu1 }
 0x143   :  { %v518_v25 = vadd.f32 %v895_v23, %v517_v24 }
 0x145   :  { %v521_v26 = vmax.f32 %v518_v25, 0.0 }
 0x147   :  { %v522_v27 = vpack.c.bf16 %v521_v26, %v521_v26  ;;  %604 = vst [vmem:[%s1141_s7] sm:$0xff] %v521_v26 }
 0x149   :  { %599 = vmatmul.bf16.vlgmr.msrb.gmra.mxu2 %v522_v27 }
 0x14a   :  { %v519_v28 = vpop.f32.mrf.mxu1 }
 0x1cc   :  { %v600_v30 = vpop.f32.mrf.mxu2 }
 0x1cd   :  { %v601_v31 = vadd.f32 %v896_v29, %v600_v30 }
 0x1cf   :  { %605 = vst [vmem:[%s1142_s8] sm:$0xff] %v601_v31 }
 0x1d4   :  { %v602_v32 = vpop.f32.mrf.mxu2 }

</bundles_post_ra>
